<compile_context>
chip_gen: v7x
topology: tpu7x:2x2x1
jax: 0.10.0
libtpu: 0.0.40
codegen_flags: <defaults>
</compile_context>

<pallas_src>
import numpy as np
import jax
import jax.numpy as jnp
from jax.experimental import pallas as pl
from jax.experimental.pallas import tpu as pltpu

LANE = 128
MAX_TILE_ROWS = 1024                 # 1024x128 f32 = 512 KiB per stream per buffer
_VMEM_LIMIT = 32 * 1024 * 1024       # explicit scoped-VMEM budget (safe on v5e/v6e/v7x)


def _round_up(x, m):
    return ((x + m - 1) // m) * m


# ----------------------------- Pallas kernel -------------------------------
def _affinity_loss_kernel(pred_ref, l1_ref, l2_ref, m1_ref, m2_ref,
                          loss_ref, nmsk_ref):
    """One grid step over a (tile_rows, 128) slab of the fused edge streams.

    Emits an (8, 128) partial for loss and for the mask count.  The row fold is
    tile-aligned (reshape keeps the minor (8, 128) dims) so it lowers to plain
    vreg adds on the VALU; the cross-sublane/lane reduction is deferred to a
    single tiny JAX-side sum over the partials.
    """
    p = pred_ref[...]
    l1 = l1_ref[...]
    l2 = l2_ref[...]
    m = m1_ref[...] * m2_ref[...]

    # true affinity: (l1 == l2) & (l1 != 0) & (l2 != 0)
    t = jnp.where((l1 == l2) & (l1 != 0.0) & (l2 != 0.0),
                  jnp.float32(1.0), jnp.float32(0.0))
    # numerically-stable BCE with logits, weighted by the affinity mask
    bce = jnp.maximum(p, 0.0) - p * t + jnp.log1p(jnp.exp(-jnp.abs(p)))
    wloss = bce * m
    cnt = (m > 0.0).astype(jnp.float32)

    rows = wloss.shape[0]
    loss_ref[...] = jnp.sum(wloss.reshape(rows // 8, 8, LANE), axis=0)
    nmsk_ref[...] = jnp.sum(cnt.reshape(rows // 8, 8, LANE), axis=0)


def _fused_edge_loss(pred_list, l1_list, l2_list, m1_list, m2_list):
    """Masked BCE-with-logits loss + mask count for ALL edges in one pallas_call."""
    def cat(arrs):
        return jnp.concatenate(
            [jnp.reshape(a, (-1,)).astype(jnp.float32) for a in arrs])

    streams = [cat(s) for s in (pred_list, l1_list, l2_list, m1_list, m2_list)]
    n = int(streams[0].shape[0])

    rows = _round_up(max(n, 1), LANE) // LANE
    tile_rows = min(MAX_TILE_ROWS, _round_up(rows, 8))
    rows_padded = _round_up(rows, tile_rows)
    total = rows_padded * LANE
    grid = rows_padded // tile_rows

    # Zero padding is benign: padded elements have m = 0 and t = 0, so they
    # contribute nothing to either the loss or the mask count.
    streams = [jnp.pad(s, (0, total - n)).reshape(rows_padded, LANE)
               for s in streams]

    in_spec = pl.BlockSpec((tile_rows, LANE), lambda i: (i, 0))
    out_spec = pl.BlockSpec((8, LANE), lambda i: (i, 0))
    out_sds = jax.ShapeDtypeStruct((grid * 8, LANE), jnp.float32)

    loss_part, nmsk_part = pl.pallas_call(
        _affinity_loss_kernel,
        out_shape=(out_sds, out_sds),
        grid_spec=pltpu.PrefetchScalarGridSpec(
            num_scalar_prefetch=0,
            grid=(grid,),
            in_specs=[in_spec] * 5,
            out_specs=(out_spec, out_spec)),
        compiler_params=pltpu.CompilerParams(
            dimension_semantics=("parallel",),       # megacore-shardable on v7x
            vmem_limit_bytes=_VMEM_LIMIT),
    )(*streams)

    return jnp.sum(loss_part), jnp.sum(nmsk_part)


# ------------------------------ glue (JAX) ---------------------------------
def _crop(x, edge):
    """get_pair_first: crop the last 3 dims according to the edge offset."""
    dz, dy, dx = edge
    D, H, W = x.shape[-3:]
    os1 = (max(dz, 0), max(dy, 0), max(dx, 0))
    os2 = (max(-dz, 0), max(-dy, 0), max(-dx, 0))
    return x[..., os1[0]:D - os2[0], os1[1]:H - os2[1], os1[2]:W - os2[2]]


def _get_pair(x, edge):
    neg = tuple(-e for e in edge)
    return _crop(x, edge), _crop(x, neg)


class AffinityLoss:
    """JAX/Pallas port of deepem AffinityLoss (criterion = masked BCE-with-logits)."""

    def __init__(self, edges, size_average=False, class_balancing=False):
        assert len(edges) > 0
        self.edges = [tuple(int(v) for v in e) for e in edges]
        self.size_average = size_average
        # TODO(synk): class_balancing needs global per-class sums before re-weighting;
        # the reference default is False, so it is not implemented here.
        assert not class_balancing

    def __call__(self, preds, label, mask):
        # preds: (N, C, D, H, W) logits, C == len(edges)
        # label: (N, 1, D, H, W) segmentation ids (float storage)
        # mask : (N, 1, D, H, W)
        assert preds.shape[-4] == len(self.edges)
        pred_l, l1_l, l2_l, m1_l, m2_l = [], [], [], [], []
        for i, edge in enumerate(self.edges):
            pred_i = preds[..., i:i + 1, :, :, :]        # Decoder channel select
            pred_l.append(_crop(pred_i, edge))           # get_pair_first
            l1, l2 = _get_pair(label, edge)
            m1, m2 = _get_pair(mask, edge)
            l1_l.append(l1); l2_l.append(l2)
            m1_l.append(m1); m2_l.append(m2)

        # Single fused Pallas reduction over all edges.
        loss, nmsk = _fused_edge_loss(pred_l, l1_l, l2_l, m1_l, m2_l)

        # nmsk == 0  ->  loss = 0
        loss = jnp.where(nmsk > 0, loss, jnp.float32(0.0))
        if self.size_average:
            loss = jnp.where(nmsk > 0, loss / jnp.maximum(nmsk, 1.0), loss)
            nmsk = jnp.where(nmsk > 0, jnp.float32(1.0), nmsk)
        return loss, nmsk


# --------------------------- pure-JAX reference -----------------------------
def _reference(edges, preds, label, mask, size_average=False):
    loss = 0.0
    nmsk = 0.0
    for i, edge in enumerate(edges):
        p = _crop(preds[..., i:i + 1, :, :, :], edge).astype(jnp.float32)
        l1, l2 = _get_pair(label, edge)
        m1, m2 = _get_pair(mask, edge)
        t = ((l1 == l2) & (l1 != 0) & (l2 != 0)).astype(jnp.float32)
        m = (m1 * m2).astype(jnp.float32)
        bce = jnp.maximum(p, 0.0) - p * t + jnp.log1p(jnp.exp(-jnp.abs(p)))
        loss = loss + jnp.sum(bce * m)
        nmsk = nmsk + jnp.sum((m > 0).astype(jnp.float32))
    loss = jnp.where(nmsk > 0, loss, 0.0)
    if size_average:
        loss = jnp.where(nmsk > 0, loss / jnp.maximum(nmsk, 1.0), loss)
        nmsk = jnp.where(nmsk > 0, 1.0, nmsk)
    return loss, nmsk


# ---------------------------------- main ------------------------------------
if __name__ == "__main__":
    edges = [(0, 0, 1), (0, 1, 0), (1, 0, 0)]
    N, C, D, H, W = 2, len(edges), 8, 16, 16

    key = jax.random.PRNGKey(0)
    k1, k2, k3 = jax.random.split(key, 3)
    preds = jax.random.normal(k1, (N, C, D, H, W), dtype=jnp.float32)
    label = jax.random.randint(k2, (N, 1, D, H, W), 0, 4).astype(jnp.float32)
    mask = (jax.random.uniform(k3, (N, 1, D, H, W)) > 0.1).astype(jnp.float32)

    loss_fn = AffinityLoss(edges, size_average=False, class_balancing=False)
    fwd = jax.jit(lambda p, l, m: loss_fn(p, l, m))
    loss, nmsk = fwd(preds, label, mask)
    loss = jax.block_until_ready(loss)
    nmsk = jax.block_until_ready(nmsk)

    ref_loss, ref_nmsk = _reference(edges, preds, label, mask, size_average=False)
    np.testing.assert_allclose(np.asarray(loss), np.asarray(ref_loss),
                               rtol=1e-4, atol=1e-3)
    np.testing.assert_allclose(np.asarray(nmsk), np.asarray(ref_nmsk),
                               rtol=0, atol=0.5)

    print("KERNEL_OK")
</pallas_src>

<mosaic_0001>
module attributes {stable_mosaic.version = 11 : i64} {
  func.func @_affinity_loss_kernel(%arg0: i32, %arg1: memref<88x128xf32, #tpu.memory_space<vmem>>, %arg2: memref<88x128xf32, #tpu.memory_space<vmem>>, %arg3: memref<88x128xf32, #tpu.memory_space<vmem>>, %arg4: memref<88x128xf32, #tpu.memory_space<vmem>>, %arg5: memref<88x128xf32, #tpu.memory_space<vmem>>, %arg6: memref<8x128xf32, #tpu.memory_space<vmem>>, %arg7: memref<8x128xf32, #tpu.memory_space<vmem>>) attributes {dimension_semantics = [#tpu.dimension_semantics<parallel>], iteration_bounds = array<i64: 1>, scalar_prefetch = 0 : i64, scratch_operands = 0 : i64, tpu.core_type = #tpu.core_type<tc>, window_params = [{transform_indices = @transform_0, window_bounds = array<i64: 88, 128>}, {transform_indices = @transform_1, window_bounds = array<i64: 88, 128>}, {transform_indices = @transform_2, window_bounds = array<i64: 88, 128>}, {transform_indices = @transform_3, window_bounds = array<i64: 88, 128>}, {transform_indices = @transform_4, window_bounds = array<i64: 88, 128>}, {transform_indices = @transform_5, window_bounds = array<i64: 8, 128>}, {transform_indices = @transform_6, window_bounds = array<i64: 8, 128>}]} {
    %c0 = arith.constant 0 : index
    %c0_0 = arith.constant 0 : index
    %0 = vector.load %arg1[%c0, %c0_0] : memref<88x128xf32, #tpu.memory_space<vmem>>, vector<88x128xf32>
    %c0_1 = arith.constant 0 : index
    %c0_2 = arith.constant 0 : index
    %1 = vector.load %arg2[%c0_1, %c0_2] : memref<88x128xf32, #tpu.memory_space<vmem>>, vector<88x128xf32>
    %c0_3 = arith.constant 0 : index
    %c0_4 = arith.constant 0 : index
    %2 = vector.load %arg3[%c0_3, %c0_4] : memref<88x128xf32, #tpu.memory_space<vmem>>, vector<88x128xf32>
    %c0_5 = arith.constant 0 : index
    %c0_6 = arith.constant 0 : index
    %3 = vector.load %arg4[%c0_5, %c0_6] : memref<88x128xf32, #tpu.memory_space<vmem>>, vector<88x128xf32>
    %c0_7 = arith.constant 0 : index
    %c0_8 = arith.constant 0 : index
    %4 = vector.load %arg5[%c0_7, %c0_8] : memref<88x128xf32, #tpu.memory_space<vmem>>, vector<88x128xf32>
    %5 = arith.mulf %3, %4 : vector<88x128xf32>
    %6 = arith.cmpf oeq, %1, %2 : vector<88x128xf32>
    %cst = arith.constant 0.000000e+00 : f32
    %7 = vector.broadcast %cst : f32 to vector<88x128xf32>
    %8 = arith.cmpf one, %1, %7 : vector<88x128xf32>
    %9 = arith.andi %6, %8 : vector<88x128xi1>
    %cst_9 = arith.constant 0.000000e+00 : f32
    %10 = vector.broadcast %cst_9 : f32 to vector<88x128xf32>
    %11 = arith.cmpf one, %2, %10 : vector<88x128xf32>
    %12 = arith.andi %9, %11 : vector<88x128xi1>
    %cst_10 = arith.constant 1.000000e+00 : f32
    %cst_11 = arith.constant 0.000000e+00 : f32
    %13 = vector.broadcast %cst_10 : f32 to vector<88x128xf32>
    %14 = vector.broadcast %cst_11 : f32 to vector<88x128xf32>
    %15 = arith.select %12, %13, %14 : vector<88x128xi1>, vector<88x128xf32>
    %cst_12 = arith.constant 0.000000e+00 : f32
    %16 = vector.broadcast %cst_12 : f32 to vector<88x128xf32>
    %17 = arith.maximumf %0, %16 : vector<88x128xf32>
    %18 = arith.mulf %0, %15 : vector<88x128xf32>
    %19 = arith.subf %17, %18 : vector<88x128xf32>
    %20 = math.absf %0 : vector<88x128xf32>
    %cst_13 = arith.constant 0.000000e+00 : f32
    %21 = vector.broadcast %cst_13 : f32 to vector<88x128xf32>
    %22 = arith.subf %21, %20 : vector<88x128xf32>
    %23 = math.exp %22 : vector<88x128xf32>
    %24 = math.log1p %23 : vector<88x128xf32>
    %25 = arith.addf %19, %24 : vector<88x128xf32>
    %26 = arith.mulf %25, %5 : vector<88x128xf32>
    %cst_14 = arith.constant 0.000000e+00 : f32
    %27 = vector.broadcast %cst_14 : f32 to vector<88x128xf32>
    %28 = arith.cmpf ogt, %5, %27 : vector<88x128xf32>
    %29 = arith.extui %28 : vector<88x128xi1> to vector<88x128xi32>
    %30 = arith.sitofp %29 : vector<88x128xi32> to vector<88x128xf32>
    %31 = vector.shape_cast %26 : vector<88x128xf32> to vector<11x8x128xf32>
    %cst_15 = arith.constant dense<0.000000e+00> : vector<8x128xf32>
    %32 = vector.multi_reduction <add>, %31, %cst_15 [0] : vector<11x8x128xf32> to vector<8x128xf32>
    %c0_16 = arith.constant 0 : index
    %c0_17 = arith.constant 0 : index
    %33 = vector.load %arg6[%c0_16, %c0_17] : memref<8x128xf32, #tpu.memory_space<vmem>>, vector<8x128xf32>
    tpu.vector_store %arg6[%c0_16, %c0_17], %32 {strides = array<i32>} : memref<8x128xf32, #tpu.memory_space<vmem>>, vector<8x128xf32>,
    %34 = vector.shape_cast %30 : vector<88x128xf32> to vector<11x8x128xf32>
    %cst_18 = arith.constant dense<0.000000e+00> : vector<8x128xf32>
    %35 = vector.multi_reduction <add>, %34, %cst_18 [0] : vector<11x8x128xf32> to vector<8x128xf32>
    %c0_19 = arith.constant 0 : index
    %c0_20 = arith.constant 0 : index
    %36 = vector.load %arg7[%c0_19, %c0_20] : memref<8x128xf32, #tpu.memory_space<vmem>>, vector<8x128xf32>
    tpu.vector_store %arg7[%c0_19, %c0_20], %35 {strides = array<i32>} : memref<8x128xf32, #tpu.memory_space<vmem>>, vector<8x128xf32>,
    return
  }
  func.func @transform_0(%arg0: i32) -> (i32, i32) {
    %c0_i32 = arith.constant 0 : i32
    %c0_i32_0 = arith.constant 0 : i32
    return %arg0, %c0_i32 : i32, i32
  }
  func.func @transform_1(%arg0: i32) -> (i32, i32) {
    %c0_i32 = arith.constant 0 : i32
    %c0_i32_0 = arith.constant 0 : i32
    return %arg0, %c0_i32 : i32, i32
  }
  func.func @transform_2(%arg0: i32) -> (i32, i32) {
    %c0_i32 = arith.constant 0 : i32
    %c0_i32_0 = arith.constant 0 : i32
    return %arg0, %c0_i32 : i32, i32
  }
  func.func @transform_3(%arg0: i32) -> (i32, i32) {
    %c0_i32 = arith.constant 0 : i32
    %c0_i32_0 = arith.constant 0 : i32
    return %arg0, %c0_i32 : i32, i32
  }
  func.func @transform_4(%arg0: i32) -> (i32, i32) {
    %c0_i32 = arith.constant 0 : i32
    %c0_i32_0 = arith.constant 0 : i32
    return %arg0, %c0_i32 : i32, i32
  }
  func.func @transform_5(%arg0: i32) -> (i32, i32) {
    %c0_i32 = arith.constant 0 : i32
    %c0_i32_0 = arith.constant 0 : i32
    return %arg0, %c0_i32 : i32, i32
  }
  func.func @transform_6(%arg0: i32) -> (i32, i32) {
    %c0_i32 = arith.constant 0 : i32
    %c0_i32_0 = arith.constant 0 : i32
    return %arg0, %c0_i32 : i32, i32
  }
}

</mosaic_0001>

<bundles_post_ra>
// kernel: _lambda_.1
= control target key start
LH: loop header
LB: loop body
LE: loop exit
PB: predicated region body
PF: predicated region fallthrough
CT: control target
= control target key end

     0   :  { %s1251_s0 = inlined_call_operand.vmem [shape: f32[88,128], index: 0, kind: input, shape index: {}]   ;;  %s1252_s1 = inlined_call_operand.vmem [shape: f32[88,128], index: 1, kind: input, shape index: {}]   ;;  %s1253_s2 = inlined_call_operand.vmem [shape: f32[88,128], index: 2, kind: input, shape index: {}]   ;;  %s1254_s3 = inlined_call_operand.vmem [shape: f32[88,128], index: 3, kind: input, shape index: {}]   ;;  %s1255_s4 = inlined_call_operand.vmem [shape: f32[88,128], index: 4, kind: input, shape index: {}]   ;;  %s1256_s5 = inlined_call_operand.vmem [shape: f32[8,128], index: 5, kind: output, shape index: {0}]   ;;  %s1257_s6 = inlined_call_operand.vmem [shape: f32[8,128], index: 6, kind: output, shape index: {1}]  }
   0x1   :  { %v510_v0 = vld [vmem:[%s1251_s0] sm:$0xff]  ;;  %v515_v1 = vld [vmem:[%s1251_s0 + $0x8] sm:$0xff]  ;;  %v520_v2 = vld [vmem:[%s1251_s0 + $0x10] sm:$0xff] }
   0x2   :  { %v525_v3 = vld [vmem:[%s1251_s0 + $0x18] sm:$0xff]  ;;  %v530_v4 = vld [vmem:[%s1251_s0 + $0x20] sm:$0xff]  ;;  %v535_v5 = vld [vmem:[%s1251_s0 + $0x28] sm:$0xff]  ;;  %v154_v9 = vmax.f32 %v510_v0, 0.0  ;;  %v155_v13 = vmax.f32 %v515_v1, 0.0  ;;  %v156_v14 = vmax.f32 %v520_v2, 0.0 }
   0x3   :  { %v540_v6 = vld [vmem:[%s1251_s0 + $0x30] sm:$0xff]  ;;  %v545_v7 = vld [vmem:[%s1251_s0 + $0x38] sm:$0xff]  ;;  %v33_v8 = vld [vmem:[%s1252_s1] sm:$0xff]  ;;  %v157_v15 = vmax.f32 %v525_v3, 0.0  ;;  %v158_v19 = vmax.f32 %v530_v4, 0.0  ;;  %v159_v20 = vmax.f32 %v535_v5, 0.0 }
   0x4   :  { %v554_v10 = vld [vmem:[%s1251_s0 + $0x40] sm:$0xff]  ;;  %v559_v11 = vld [vmem:[%s1251_s0 + $0x48] sm:$0xff]  ;;  %v570_v16 = vld [vmem:[%s1251_s0 + $0x50] sm:$0xff]  ;;  %v160_v21 = vmax.f32 %v540_v6, 0.0  ;;  %vm99_vm0 = vcmp.ne.f32.partialorder %v33_v8, 0.0 }
   0x5   :  { %v34_v12 = vld [vmem:[%s1252_s1 + $0x8] sm:$0xff]  ;;  %v35_v17 = vld [vmem:[%s1252_s1 + $0x10] sm:$0xff]  ;;  %v36_v18 = vld [vmem:[%s1252_s1 + $0x18] sm:$0xff]  ;;  %v187_v34 = vand.u32 2147483647, %v510_v0 }
   0x6   :  { %v37_v22 = vld [vmem:[%s1252_s1 + $0x20] sm:$0xff]  ;;  %v587_v23 = vld [vmem:[%s1252_s1 + $0x28] sm:$0xff]  ;;  %v599_v27 = vld [vmem:[%s1252_s1 + $0x30] sm:$0xff]  ;;  %vm100_vm1 = vcmp.ne.f32.partialorder %v34_v12, 0.0  ;;  %v188_v35 = vand.u32 2147483647, %v515_v1 }
   0x7   :  { %v592_v24 = vld [vmem:[%s1253_s2] sm:$0xff]  ;;  %v604_v28 = vld [vmem:[%s1252_s1 + $0x38] sm:$0xff]  ;;  %v609_v29 = vld [vmem:[%s1253_s2 + $0x8] sm:$0xff]  ;;  %vm101_vm3 = vcmp.ne.f32.partialorder %v35_v17, 0.0  ;;  %vm102_vm4 = vcmp.ne.f32.partialorder %v36_v18, 0.0  ;;  %vm103_vm6 = vcmp.ne.f32.partialorder %v37_v22, 0.0 }
   0x8   :  { %v616_v32 = vld [vmem:[%s1252_s1 + $0x40] sm:$0xff]  ;;  %v621_v33 = vld [vmem:[%s1253_s2 + $0x10] sm:$0xff]  ;;  %v628_v36 = vld [vmem:[%s1253_s2 + $0x18] sm:$0xff]  ;;  %vm88_vm2 = vcmp.eq.f32.partialorder %v33_v8, %v592_v24  ;;  %v189_v37 = vand.u32 2147483647, %v520_v2  ;;  %vm89_vm5 = vcmp.eq.f32.partialorder %v34_v12, %v609_v29  ;;  %vm104_vm7 = vcmp.ne.f32.partialorder %v587_v23, 0.0 }
   0x9   :  { %v635_v38 = vld [vmem:[%s1252_s1 + $0x48] sm:$0xff]  ;;  %v640_v39 = vld [vmem:[%s1253_s2 + $0x20] sm:$0xff]  ;;  %v190_v40 = vand.u32 2147483647, %v525_v3  ;;  %vm90_vm8 = vcmp.eq.f32.partialorder %v35_v17, %v621_v33  ;;  %vm105_vm9 = vcmp.ne.f32.partialorder %v599_v27, 0.0  ;;  %vm106_vm10 = vcmp.ne.f32.partialorder %v604_v28, 0.0  ;;  %vm668_vm13 = vmand %vm88_vm2, %vm99_vm0 }
   0xa   :  { %v648_v41 = vld [vmem:[%s1253_s2 + $0x28] sm:$0xff]  ;;  %v657_v42 = vld [vmem:[%s1253_s2 + $0x30] sm:$0xff]  ;;  %v662_v43 = vld [vmem:[%s1253_s2 + $0x38] sm:$0xff]  ;;  %vm91_vm12 = vcmp.eq.f32.partialorder %v36_v18, %v628_v36  ;;  %v191_v45 = vand.u32 2147483647, %v530_v4  ;;  %v198_v46 = vsub.f32 0.0, %v187_v34  ;;  %vm92_vm14 = vcmp.eq.f32.partialorder %v37_v22, %v640_v39 }
   0xb   :  { %v199_v47 = vsub.f32 0.0, %v188_v35  ;;  %v676_v48 = vld [vmem:[%s1253_s2 + $0x40] sm:$0xff]  ;;  %vm683_vm0 = vmand %vm89_vm5, %vm100_vm1  ;;  %v200_v50 = vsub.f32 0.0, %v189_v37  ;;  %v692_v51 = vld [vmem:[%s1253_s2 + $0x48] sm:$0xff]  ;;  %vm93_vm15 = vcmp.eq.f32.partialorder %v587_v23, %v648_v41  ;;  %v192_v53 = vand.u32 2147483647, %v535_v5 }
   0xc   :  { %vm699_vm1 = vmand %vm90_vm8, %vm101_vm3  ;;  %v201_v54 = vsub.f32 0.0, %v190_v40  ;;  %v209_v55 = vmul.f32 1.442695, %v198_v46  ;;  %vm94_vm5 = vcmp.eq.f32.partialorder %v599_v27, %v657_v42  ;;  %vm95_vm11 = vcmp.eq.f32.partialorder %v604_v28, %v662_v43  ;;  %v719_v58 = vld [vmem:[%s1252_s1 + $0x50] sm:$0xff]  ;;  %v55_v63 = vld [vmem:[%s1254_s3] sm:$0xff] }
   0xd   :  { %vm711_vm2 = vmand %vm91_vm12, %vm102_vm4  ;;  %vm123_vm3 = vcmp.ne.f32.partialorder %v621_v33, 0.0  ;;  %v211_v57 = vmul.f32 1.442695, %v199_v47  ;;  %v724_v59 = vld [vmem:[%s1253_s2 + $0x50] sm:$0xff]  ;;  %vm96_vm8 = vcmp.eq.f32.partialorder %v616_v32, %v676_v48  ;;  %v193_v61 = vand.u32 2147483647, %v540_v6 }
   0xe   :  { %vm731_vm4 = vmand %vm92_vm14, %vm103_vm6  ;;  %v202_v62 = vsub.f32 0.0, %v191_v45  ;;  %427 = vpow2.f32 %v209_v55  ;;  %vm97_vm12 = vcmp.eq.f32.partialorder %v635_v38, %v692_v51  ;;  %v194_v12 = vand.u32 2147483647, %v545_v7  ;;  %v56_v18 = vld [vmem:[%s1254_s3 + $0x8] sm:$0xff]  ;;  %v57_v22 = vld [vmem:[%s1254_s3 + $0x10] sm:$0xff] }
   0xf   :  { %vm746_vm6 = vmand %vm93_vm15, %vm104_vm7  ;;  %v213_v17 = vmul.f32 1.442695, %v200_v50  ;;  %v58_v23 = vld [vmem:[%s1254_s3 + $0x18] sm:$0xff]  ;;  %v195_v35 = vand.u32 2147483647, %v554_v10  ;;  %v203_v37 = vsub.f32 0.0, %v192_v53  ;;  %429 = vpow2.f32 %v211_v57 }
  0x10   :  { %vm766_vm7 = vmand %vm94_vm5, %vm105_vm9  ;;  %v215_v40 = vmul.f32 1.442695, %v201_v54  ;;  %v59_v45 = vld [vmem:[%s1254_s3 + $0x20] sm:$0xff]  ;;  %v67_v27 = vld [vmem:[%s1255_s4 + $0x8] sm:$0xff]  ;;  %vm1274_vm15 = vcmp.ne.f32.partialorder %v592_v24, 0.0  ;;  %v204_v54 = vsub.f32 0.0, %v193_v61 }
  0x11   :  { %v66_v46 = vld [vmem:[%s1255_s4] sm:$0xff]  ;;  %vm786_vm9 = vmand %vm95_vm11, %vm106_vm10  ;;  %v68_v50 = vld [vmem:[%s1255_s4 + $0x10] sm:$0xff]  ;;  %v217_v55 = vmul.f32 1.442695, %v202_v62  ;;  %vm130_vm10 = vcmp.ne.f32.partialorder %v692_v51, 0.0  ;;  %vm1277_vm11 = vcmp.ne.f32.partialorder %v609_v29, 0.0  ;;  %431 = vpow2.f32 %v213_v17 }
  0x12   :  { %v69_v53 = vld [vmem:[%s1255_s4 + $0x18] sm:$0xff]  ;;  %vm807_vm14 = vmand %vm668_vm13, %vm1274_vm15  ;;  %v70_v57 = vld [vmem:[%s1255_s4 + $0x20] sm:$0xff]  ;;  %v196_v44 = vand.u32 2147483647, %v559_v11  ;;  %v197_v31 = vand.u32 2147483647, %v570_v16  ;;  %v831_v30 = vmul.f32 %v66_v46, %v55_v63  ;;  %433 = vpow2.f32 %v215_v40 }
  0x13   :  { %vm819_vm5 = vmand %vm683_vm0, %vm1277_vm11  ;;  %v205_v61 = vsub.f32 0.0, %v194_v12  ;;  %v60_v62 = vld [vmem:[%s1254_s3 + $0x28] sm:$0xff]  ;;  %vm1280_vm13 = vcmp.ne.f32.partialorder %v616_v32, 0.0  ;;  %v206_v12 = vsub.f32 0.0, %v195_v35  ;;  %v219_v17 = vmul.f32 1.442695, %v203_v37 }
  0x14   :  { %v71_v29 = vld [vmem:[%s1255_s4 + $0x28] sm:$0xff]  ;;  %vm838_vm0 = vmand %vm96_vm8, %vm1280_vm13  ;;  %v61_v26 = vld [vmem:[%s1254_s3 + $0x30] sm:$0xff]  ;;  %v848_v46 = vmul.f32 %v67_v27, %v56_v18  ;;  %v850_v25 = vmul.f32 %v68_v50, %v57_v22  ;;  %v852_v32 = vmul.f32 %v69_v53, %v58_v23  ;;  %vm131_vm8 = vcmp.ne.f32.partialorder %v724_v59, 0.0 }
  0x15   :  { %v62_v63 = vld [vmem:[%s1254_s3 + $0x38] sm:$0xff]  ;;  %vm859_vm15 = vmand %vm699_vm1, %vm123_vm3  ;;  %v471_v37 = vmov 0.0   ;;  %v72_v22 = vld [vmem:[%s1255_s4 + $0x30] sm:$0xff]  ;;  %v872_v33 = vmul.f32 %v70_v57, %v59_v45  ;;  %vm1285_vm1 = vcmp.ne.f32.partialorder %v635_v38, 0.0  ;;  %435 = vpow2.f32 %v217_v55 }
  0x16   :  { %v143_v18 = vsel %vm807_vm14, 1.0, %v471_v37  ;;  %v73_v23 = vld [vmem:[%s1255_s4 + $0x38] sm:$0xff]  ;;  %vm879_vm3 = vmand %vm97_vm12, %vm1285_vm1  ;;  %v144_v40 = vsel %vm819_vm5, 1.0, %v471_v37  ;;  %v221_v27 = vmul.f32 1.442695, %v204_v54  ;;  %v63_v45 = vld [vmem:[%s1254_s3 + $0x40] sm:$0xff]  ;;  %v892_v53 = vmul.f32 %v71_v29, %v60_v62 }
  0x17   :  { %v74_v50 = vld [vmem:[%s1255_s4 + $0x40] sm:$0xff]  ;;  %vm1288_vm12 = vcmp.ne.f32.partialorder %v628_v36, 0.0  ;;  %v207_v28 = vsub.f32 0.0, %v196_v44  ;;  %v208_v54 = vsub.f32 0.0, %v197_v31  ;;  %v223_v55 = vmul.f32 1.442695, %v205_v61 }
  0x18   :  { %vm898_vm14 = vmand %vm711_vm2, %vm1288_vm12  ;;  %v902_v57 = vpop.eup %427  ;;  %vm1291_vm5 = vcmp.ne.f32.partialorder %v640_v39, 0.0  ;;  %v145_v36 = vsel %vm859_vm15, 1.0, %v471_v37  ;;  %v165_v56 = vmul.f32 %v143_v18, %v510_v0  ;;  %437 = vpow2.f32 %v219_v17 }
  0x19   :  { %vm908_vm11 = vmand %vm731_vm4, %vm1291_vm5  ;;  %v225_v44 = vmul.f32 1.442695, %v206_v12  ;;  %v916_v31 = vmul.f32 %v72_v22, %v61_v26  ;;  %v918_v61 = vmul.f32 %v73_v23, %v62_v63  ;;  %vm1294_vm2 = vcmp.ne.f32.partialorder %v648_v41, 0.0  ;;  %v944_v29 = vpop.eup %429 }
  0x1a   :  { %vm924_vm4 = vmand %vm746_vm6, %vm1294_vm2  ;;  %v166_v60 = vmul.f32 %v144_v40, %v515_v1  ;;  %vm352_vm13 = vcmp.gt.f32.partialorder %v831_v30, 0.0  ;;  %v930_v62 = vmul.f32 %v74_v50, %v63_v45  ;;  %vm1297_vm15 = vcmp.ne.f32.partialorder %v657_v42, 0.0 }
  0x1b   :  { %vm936_vm1 = vmand %vm766_vm7, %vm1297_vm15  ;;  %v146_v41 = vsel %vm898_vm14, 1.0, %v471_v37  ;;  %439 = vpow2.f32 %v221_v27  ;;  %v231_v8 = vadd.f32 1.0, %v902_v57  ;;  %vm1300_vm6 = vcmp.ne.f32.partialorder %v662_v43, 0.0  ;;  %v975_v18 = vpop.eup %431 }
  0x1c   :  { %vm950_vm12 = vmand %vm786_vm9, %vm1300_vm6  ;;  %v147_v34 = vsel %vm908_vm11, 1.0, %v471_v37  ;;  %v167_v12 = vmul.f32 %v145_v36, %v520_v2  ;;  %441 = vpow2.f32 %v223_v55  ;;  %v227_v17 = vmul.f32 1.442695, %v207_v28  ;;  %v997_v23 = vpop.eup %433 }
  0x1d   :  { %vm1303_vm7 = vcmp.ne.f32.partialorder %v676_v48, 0.0  ;;  %v968_v47 = vsub.f32 %v154_v9, %v165_v56  ;;  %443 = vpow2.f32 %v225_v44  ;;  %v229_v63 = vmul.f32 1.442695, %v208_v54  ;;  %vm141_vm11 = vmand %vm879_vm3, %vm130_vm10 }
  0x1e   :  { %vm962_vm14 = vmand %vm838_vm0, %vm1303_vm7  ;;  %v973_v35 = vsel %vm352_vm13, 1.0, %v471_v37  ;;  %vm1306_vm9 = vcmp.ne.f32.partialorder %v719_v58, 0.0  ;;  %vm1307_vm0 = vcmp.eq.f32.partialorder %v719_v58, %v724_v59  ;;  %v148_v0 = vsel %vm924_vm4, 1.0, %v471_v37 }
  0x1f   :  { %vm982_vm5 = vmand %vm1307_vm0, %vm1306_vm9  ;;  %v149_v9 = vsel %vm936_vm1, 1.0, %v471_v37  ;;  %v168_v49 = vmul.f32 %v146_v41, %v525_v3  ;;  %v995_v22 = vsub.f32 %v155_v13, %v166_v60  ;;  %v150_v58 = vsel %vm950_vm12, 1.0, %v471_v37  ;;  %v1016_v52 = vpop.eup %435 }
  0x20   :  { %v169_v40 = vmul.f32 %v147_v34, %v530_v4  ;;  %445 = vlog2.f32 %v231_v8  ;;  %v240_v27 = vadd.f32 1.0, %v944_v29  ;;  %v151_v1 = vsel %vm962_vm14, 1.0, %v471_v37  ;;  %vm142_vm10 = vmand %vm982_vm5, %vm131_vm8 }
  0x21   :  { %v1013_v13 = vsub.f32 %v156_v14, %v167_v12  ;;  %447 = vpow2.f32 %v227_v17  ;;  %v234_v51 = vmul.f32 -0.5, %v902_v57  ;;  %v170_v45 = vmul.f32 %v148_v0, %v535_v5 }
  0x22   :  { %v171_v50 = vmul.f32 %v149_v9, %v540_v6  ;;  %449 = vlog2.f32 %v240_v27  ;;  %v249_v38 = vadd.f32 1.0, %v975_v18  ;;  %v152_v2 = vsel %vm141_vm11, 1.0, %v471_v37  ;;  %v1028_v54 = vpop.eup %437 }
  0x23   :  { %v172_v14 = vmul.f32 %v150_v58, %v545_v7  ;;  %451 = vpow2.f32 %v229_v63  ;;  %v258_v28 = vadd.f32 1.0, %v997_v23  ;;  %v173_v59 = vmul.f32 %v151_v1, %v554_v10 }
  0x24   :  { %v1033_v55 = vsub.f32 %v157_v15, %v168_v49  ;;  %v1037_v24 = vsub.f32 %v158_v19, %v169_v40  ;;  %453 = vlog2.f32 %v249_v38  ;;  %v153_v36 = vsel %vm142_vm10, 1.0, %v471_v37 }
  0x25   :  { %v235_v56 = vadd.f32 1.0, %v234_v51  ;;  %v243_v44 = vmul.f32 -0.5, %v944_v29  ;;  %v267_v39 = vadd.f32 1.0, %v1016_v52  ;;  %v1042_v60 = vpop.eup %439  ;;  %v174_v26 = vmul.f32 %v152_v2, %v559_v11 }
  0x26   :  { %v1047_v3 = vsub.f32 %v159_v20, %v170_v45  ;;  %v1051_v4 = vsub.f32 %v160_v21, %v171_v50  ;;  %455 = vlog2.f32 %v258_v28  ;;  %v1053_v15 = vpop.eup %441  ;;  %v1310_v19 = vmax.f32 %v545_v7, 0.0 }
  0x27   :  { %v237_v8 = vand.u32 2147483647, %v902_v57  ;;  %v252_v42 = vmul.f32 -0.5, %v975_v18  ;;  %v276_v34 = vadd.f32 1.0, %v1028_v54  ;;  %v1062_v5 = vpop.eup %443  ;;  %v1065_v20 = vmul.f32 %v153_v36, %v570_v16 }
  0x28   :  { %v1057_v41 = vsub.f32 %v1310_v19, %v172_v14  ;;  %v1311_v6 = vmax.f32 %v554_v10, 0.0  ;;  %v246_v12 = vand.u32 2147483647, %v944_v29  ;;  %457 = vlog2.f32 %v267_v39 }
  0x29   :  { %v1073_v7 = vmul.f32 %v902_v57, %v235_v56  ;;  %v244_v17 = vadd.f32 1.0, %v243_v44  ;;  %v261_v43 = vmul.f32 -0.5, %v997_v23  ;;  %v285_v63 = vadd.f32 1.0, %v1042_v60 }
  0x2a   :  { %v1069_v21 = vsub.f32 %v1311_v6, %v173_v59  ;;  %v446_v48 = vpop.eup %445  ;;  %v255_v0 = vand.u32 2147483647, %v975_v18  ;;  %v264_v9 = vand.u32 2147483647, %v997_v23  ;;  %v270_v10 = vmul.f32 -0.5, %v1016_v52 }
  0x2b   :  { %459 = vlog2.f32 %v276_v34  ;;  %v1080_v49 = vpop.eup %447  ;;  %v1312_v58 = vmax.f32 %v559_v11, 0.0  ;;  %vm1086_vm8 = vcmp.lt.f32.partialorder %v237_v8, 0.0004427343  ;;  %v253_v27 = vadd.f32 1.0, %v252_v42 }
  0x2c   :  { %v294_v1 = vadd.f32 1.0, %v1053_v15  ;;  %v450_v51 = vpop.eup %449  ;;  %vm1091_vm3 = vcmp.lt.f32.partialorder %v246_v12, 0.0004427343  ;;  %v279_v50 = vmul.f32 -0.5, %v1028_v54  ;;  %461 = vlog2.f32 %v285_v63 }
  0x2d   :  { %v1084_v40 = vsub.f32 %v1312_v58, %v174_v26  ;;  %v303_v38 = vadd.f32 1.0, %v1062_v5  ;;  %v1097_v11 = vpop.eup %451  ;;  %v233_v2 = vmul.f32 0.6931472, %v446_v48  ;;  %v245_v14 = vmul.f32 %v944_v29, %v244_v17 }
  0x2e   :  { %v262_v28 = vadd.f32 1.0, %v261_v43  ;;  %v273_v59 = vand.u32 2147483647, %v1016_v52  ;;  %v454_v36 = vpop.eup %453  ;;  %vm1101_vm2 = vcmp.lt.f32.partialorder %v255_v0, 0.0004427343  ;;  %v271_v39 = vadd.f32 1.0, %v270_v10 }
  0x2f   :  { %vm1105_vm4 = vcmp.lt.f32.partialorder %v264_v9, 0.0004427343  ;;  %463 = vlog2.f32 %v294_v1  ;;  %v242_v26 = vmul.f32 0.6931472, %v450_v51  ;;  %v254_v19 = vmul.f32 %v975_v18, %v253_v27 }
  0x30   :  { %v282_v8 = vand.u32 2147483647, %v1028_v54  ;;  %v288_v29 = vmul.f32 -0.5, %v1042_v60  ;;  %v456_v42 = vpop.eup %455  ;;  %v280_v34 = vadd.f32 1.0, %v279_v50  ;;  %v297_v6 = vmul.f32 -0.5, %v1053_v15 }
  0x31   :  { %465 = vlog2.f32 %v303_v38  ;;  %v312_v12 = vadd.f32 1.0, %v1080_v49  ;;  %v239_v17 = vsel %vm1086_vm8, %v1073_v7, %v233_v2  ;;  %v251_v43 = vmul.f32 0.6931472, %v454_v36 }
  0x32   :  { %v263_v63 = vmul.f32 %v997_v23, %v262_v28  ;;  %vm1118_vm13 = vcmp.lt.f32.partialorder %v273_v59, 0.0004427343  ;;  %vm353_vm15 = vcmp.gt.f32.partialorder %v848_v46, 0.0  ;;  %v458_v48 = vpop.eup %457  ;;  %v272_v0 = vmul.f32 %v1016_v52, %v271_v39 }
  0x33   :  { %v291_v9 = vand.u32 2147483647, %v1042_v60  ;;  %v306_v10 = vmul.f32 -0.5, %v1062_v5  ;;  %467 = vlog2.f32 %v312_v12  ;;  %v248_v7 = vsel %vm1091_vm3, %v245_v14, %v242_v26 }
  0x34   :  { %v260_v58 = vmul.f32 0.6931472, %v456_v42  ;;  %v289_v57 = vadd.f32 1.0, %v288_v29  ;;  %v321_v23 = vadd.f32 1.0, %v1097_v11  ;;  %vm354_vm1 = vcmp.gt.f32.partialorder %v850_v25, 0.0 }
  0x35   :  { %v460_v27 = vpop.eup %459  ;;  %v281_v1 = vmul.f32 %v1028_v54, %v280_v34  ;;  %vm1131_vm6 = vcmp.lt.f32.partialorder %v282_v8, 0.0004427343  ;;  %v298_v52 = vadd.f32 1.0, %v297_v6  ;;  %v300_v50 = vand.u32 2147483647, %v1053_v15 }
  0x36   :  { %v257_v45 = vsel %vm1101_vm2, %v254_v19, %v251_v43  ;;  %v269_v38 = vmul.f32 0.6931472, %v458_v48  ;;  %v315_v2 = vmul.f32 -0.5, %v1080_v49  ;;  %469 = vlog2.f32 %v321_v23  ;;  %v462_v14 = vpop.eup %461 }
  0x37   :  { %vm355_vm12 = vcmp.gt.f32.partialorder %v852_v32, 0.0  ;;  %vm1140_vm7 = vcmp.lt.f32.partialorder %v291_v9, 0.0004427343  ;;  %v307_v54 = vadd.f32 1.0, %v306_v10  ;;  %v330_v59 = vadd.f32 %v239_v17, %v968_v47 }
  0x38   :  { %v331_v36 = vadd.f32 %v248_v7, %v995_v22  ;;  %v266_v56 = vsel %vm1105_vm4, %v263_v63, %v260_v58  ;;  %v278_v39 = vmul.f32 0.6931472, %v460_v27  ;;  %v290_v26 = vmul.f32 %v1042_v60, %v289_v57 }
  0x39   :  { %v309_v19 = vand.u32 2147483647, %v1062_v5  ;;  %vm356_vm14 = vcmp.gt.f32.partialorder %v872_v33, 0.0  ;;  %v464_v8 = vpop.eup %463  ;;  %v299_v29 = vmul.f32 %v1053_v15, %v298_v52  ;;  %vm1152_vm9 = vcmp.lt.f32.partialorder %v300_v50, 0.0004427343 }
  0x3a   :  { %v318_v47 = vand.u32 2147483647, %v1080_v49  ;;  %v332_v22 = vadd.f32 %v257_v45, %v1013_v13  ;;  %v275_v44 = vsel %vm1118_vm13, %v272_v0, %v269_v38  ;;  %v287_v34 = vmul.f32 0.6931472, %v462_v14 }
  0x3b   :  { %v316_v60 = vadd.f32 1.0, %v315_v2  ;;  %v324_v6 = vmul.f32 -0.5, %v1097_v11  ;;  %vm357_vm0 = vcmp.gt.f32.partialorder %v892_v53, 0.0  ;;  %v466_v12 = vpop.eup %465  ;;  %v308_v15 = vmul.f32 %v1062_v5, %v307_v54 }
  0x3c   :  { %v333_v17 = vadd.f32 %v266_v56, %v1033_v55  ;;  %v341_v43 = vmul.f32 %v330_v59, %v831_v30  ;;  %v342_v63 = vmul.f32 %v331_v36, %v848_v46  ;;  %v284_v13 = vsel %vm1131_vm6, %v281_v1, %v278_v39 }
  0x3d   :  { %v296_v18 = vmul.f32 0.6931472, %v464_v8  ;;  %vm1168_vm5 = vcmp.lt.f32.partialorder %v309_v19, 0.0004427343  ;;  %v327_v0 = vand.u32 2147483647, %v1097_v11  ;;  %v468_v9 = vpop.eup %467  ;;  %v334_v55 = vadd.f32 %v275_v44, %v1037_v24 }
  0x3e   :  { %vm1173_vm11 = vcmp.lt.f32.partialorder %v318_v47, 0.0004427343  ;;  %v343_v30 = vmul.f32 %v332_v22, %v850_v25  ;;  %v416_v5 = vsel %vm353_vm15, 1.0, %v471_v37  ;;  %v293_v7 = vsel %vm1140_vm7, %v290_v26, %v287_v34 }
  0x3f   :  { %v305_v58 = vmul.f32 0.6931472, %v466_v12  ;;  %v317_v57 = vmul.f32 %v1080_v49, %v316_v60  ;;  %v325_v23 = vadd.f32 1.0, %v324_v6  ;;  %v335_v27 = vadd.f32 %v284_v13, %v1047_v3 }
  0x40   :  { %v344_v1 = vmul.f32 %v333_v17, %v852_v32  ;;  %v417_v24 = vsel %vm354_vm1, 1.0, %v471_v37  ;;  %v385_v51 = vadd.f32 %v342_v63, %v341_v43  ;;  %v470_v52 = vpop.eup %469  ;;  %v302_v46 = vsel %vm1152_vm9, %v299_v29, %v296_v18 }
  0x41   :  { %v314_v50 = vmul.f32 0.6931472, %v468_v9  ;;  %vm1192_vm10 = vcmp.lt.f32.partialorder %v327_v0, 0.0004427343  ;;  %v396_v49 = vadd.f32 %v416_v5, %v973_v35  ;;  %v336_v3 = vadd.f32 %v293_v7, %v1051_v4  ;;  %v64_v35 = vld [vmem:[%s1254_s3 + $0x48] sm:$0xff] }
  0x42   :  { %v345_v38 = vmul.f32 %v334_v55, %v872_v33  ;;  %v418_v25 = vsel %vm355_vm12, 1.0, %v471_v37  ;;  %v386_v2 = vadd.f32 %v385_v51, %v343_v30  ;;  %v311_v14 = vsel %vm1168_vm5, %v308_v15, %v305_v58  ;;  %v75_v4 = vld [vmem:[%s1255_s4 + $0x48] sm:$0xff]  ;;  %v76_v33 = vld [vmem:[%s1255_s4 + $0x50] sm:$0xff] }
  0x43   :  { %v323_v28 = vmul.f32 0.6931472, %v470_v52  ;;  %v326_v54 = vmul.f32 %v1097_v11, %v325_v23  ;;  %v397_v59 = vadd.f32 %v417_v24, %v396_v49  ;;  %v337_v36 = vadd.f32 %v302_v46, %v1057_v41  ;;  %v65_v41 = vld [vmem:[%s1254_s3 + $0x50] sm:$0xff] }
  0x44   :  { %v346_v32 = vmul.f32 %v335_v27, %v892_v53  ;;  %v419_v56 = vsel %vm356_vm14, 1.0, %v471_v37  ;;  %v387_v39 = vadd.f32 %v386_v2, %v344_v1  ;;  %v1335_v11 = vmax.f32 %v570_v16, 0.0 }
  0x45   :  { %v320_v19 = vsel %vm1173_vm11, %v317_v57, %v314_v50  ;;  %vm358_vm8 = vcmp.gt.f32.partialorder %v916_v31, 0.0  ;;  %v398_v8 = vadd.f32 %v418_v25, %v397_v59  ;;  %v338_v29 = vadd.f32 %v311_v14, %v1069_v21 }
  0x46   :  { %v186_v26 = vsub.f32 %v1335_v11, %v1065_v20  ;;  %v347_v42 = vmul.f32 %v336_v3, %v916_v31  ;;  %v420_v16 = vsel %vm357_vm0, 1.0, %v471_v37  ;;  %v388_v20 = vadd.f32 %v387_v39, %v345_v38 }
  0x47   :  { %v86_v47 = vmul.f32 %v75_v4, %v64_v35  ;;  %v329_v22 = vsel %vm1192_vm10, %v326_v54, %v323_v28  ;;  %vm359_vm3 = vcmp.gt.f32.partialorder %v918_v61, 0.0  ;;  %v399_v44 = vadd.f32 %v419_v56, %v398_v8 }
  0x48   :  { %v339_v34 = vadd.f32 %v320_v19, %v1084_v40  ;;  %v348_v60 = vmul.f32 %v337_v36, %v918_v61  ;;  %v421_v21 = vsel %vm358_vm8, 1.0, %v471_v37  ;;  %v389_v6 = vadd.f32 %v388_v20, %v346_v32 }
  0x49   :  { %v87_v31 = vmul.f32 %v76_v33, %v65_v41  ;;  %vm360_vm2 = vcmp.gt.f32.partialorder %v930_v62, 0.0  ;;  %v400_v53 = vadd.f32 %v420_v16, %v399_v44  ;;  %v340_v12 = vadd.f32 %v329_v22, %v186_v26 }
  0x4a   :  { %v349_v15 = vmul.f32 %v338_v29, %v930_v62  ;;  %v422_v17 = vsel %vm359_vm3, 1.0, %v471_v37  ;;  %v390_v43 = vadd.f32 %v389_v6, %v347_v42  ;;  %vm361_vm4 = vcmp.gt.f32.partialorder %v86_v47, 0.0 }
  0x4b   :  { %v401_v63 = vadd.f32 %v421_v21, %v400_v53  ;;  %v350_v13 = vmul.f32 %v339_v34, %v86_v47  ;;  %v423_v40 = vsel %vm360_vm2, 1.0, %v471_v37  ;;  %vm362_vm13 = vcmp.gt.f32.partialorder %v87_v31, 0.0 }
  0x4c   :  { %v391_v18 = vadd.f32 %v390_v43, %v348_v60  ;;  %v351_v48 = vmul.f32 %v340_v12, %v87_v31  ;;  %v424_v0 = vsel %vm361_vm4, 1.0, %v471_v37  ;;  %v425_v55 = vsel %vm362_vm13, 1.0, %v471_v37 }
  0x4d   :  { %v402_v61 = vadd.f32 %v422_v17, %v401_v63 }
  0x4e   :  { %v392_v9 = vadd.f32 %v391_v18, %v349_v15 }
  0x4f   :  { %v403_v10 = vadd.f32 %v423_v40, %v402_v61 }
  0x50   :  { %v393_v30 = vadd.f32 %v392_v9, %v350_v13 }
  0x51   :  { %v404_v62 = vadd.f32 %v424_v0, %v403_v10 }
  0x52   :  { %v394_v5 = vadd.f32 %v393_v30, %v351_v48 }
  0x53   :  { %v405_v7 = vadd.f32 %v425_v55, %v404_v62 }
  0x54   :  { %395 = vst [vmem:[%s1256_s5] sm:$0xff] %v394_v5 }
  0x55   :  { %406 = vst [vmem:[%s1257_s6] sm:$0xff] %v405_v7 }

</bundles_post_ra>
